<compile_context>
chip_gen: v5e
topology: v5e:2x2
jax: 0.10.0
libtpu: 0.0.40
codegen_flags: <defaults>
</compile_context>

<pallas_src>
import jax
import jax.numpy as jnp
from jax import lax
from jax.experimental import pallas as pl
from jax.experimental.pallas import tpu as pltpu


def _round_up(x, m):
    return ((x + m - 1) // m) * m


def _make_center_loss_kernel(true_batch):
    """Builds the kernel; `true_batch` (static) masks out padded rows."""

    def kernel(labels_ref, feat_ref, centers_ref, out_ref):
        # labels_ref : (B_pad,) int32 in SMEM (scalar prefetch)
        # feat_ref   : (tile_b, D) f32 in VMEM (current batch tile)
        # centers_ref: (C, D) f32 in VMEM (resident across the grid)
        # out_ref    : (1, 1) f32 partial sum for this tile
        tile_b, _ = feat_ref.shape
        num_classes = centers_ref.shape[0]
        base = pl.program_id(0) * tile_b

        def row_body(r, acc):
            lab = labels_ref[base + r]                      # scalar path (SMEM)
            lab_idx = jnp.clip(lab, 0, num_classes - 1)     # guard OOB VMEM read
            c_row = centers_ref[pl.ds(lab_idx, 1), :]       # (1, D) gathered center
            f_row = feat_ref[pl.ds(r, 1), :]                # (1, D)
            diff = f_row - c_row
            sel = jnp.sum(diff * diff, axis=1, keepdims=True)   # (1, 1), VPU+XLU
            # PyTorch-reference quirk (kept on purpose): scale the squared
            # distance by the integer class index, then clamp to [1e-12, 1e12].
            val = jnp.clip(sel * lab.astype(jnp.float32), 1e-12, 1.0e12)
            valid = (base + r) < true_batch                 # mask padded rows
            return acc + jnp.where(valid, val, 0.0)

        out_ref[...] = lax.fori_loop(
            0, tile_b, row_body, jnp.zeros((1, 1), jnp.float32),
            unroll=(tile_b <= 32))

    return kernel


def center_loss(feature, centers, labels, *, tile_b=None):
    """feature: (B, D), centers: (C, D), labels: (B,) int  ->  scalar f32 loss."""
    # TODO(synk): the torch multi-hot branch (labels.numel() > labels.size(0))
    # is not implemented; only the standard 1-D integer-label path is kept.
    # TODO(synk): for very large num_classes (centers table >> VMEM), keep
    # `centers` in HBM (memory_space=pl.ANY) and DMA-gather the labelled rows
    # instead of mapping the whole table into VMEM.
    batch, feat_dim = feature.shape
    num_classes = centers.shape[0]

    if tile_b is None:
        # Multiple of 8 sublanes; capped so the double-buffered feature tile
        # plus resident centers stay far below v7x's 64 MiB VMEM.
        tile_b = min(256, _round_up(batch, 8))
    tile_b = _round_up(tile_b, 8)
    b_pad = _round_up(batch, tile_b)
    num_tiles = b_pad // tile_b

    feature_f32 = feature.astype(jnp.float32)
    labels_i32 = labels.astype(jnp.int32)
    if b_pad != batch:
        feature_f32 = jnp.pad(feature_f32, ((0, b_pad - batch), (0, 0)))
        labels_i32 = jnp.pad(labels_i32, (0, b_pad - batch))

    grid_spec = pltpu.PrefetchScalarGridSpec(
        num_scalar_prefetch=1,
        grid=(num_tiles,),
        in_specs=[
            pl.BlockSpec((tile_b, feat_dim), lambda i, lab: (i, 0)),       # feature tile
            pl.BlockSpec((num_classes, feat_dim), lambda i, lab: (0, 0)),  # centers (resident)
        ],
        out_specs=pl.BlockSpec((1, 1), lambda i, lab: (i, 0)),             # per-tile partial
    )

    partials = pl.pallas_call(
        _make_center_loss_kernel(batch),
        out_shape=jax.ShapeDtypeStruct((num_tiles, 1), jnp.float32),
        grid_spec=grid_spec,
        compiler_params=pltpu.CompilerParams(
            dimension_semantics=("parallel",)),     # v7x: split batch over 2 TCs
        cost_estimate=pl.CostEstimate(
            flops=3 * batch * feat_dim + 3 * batch,
            transcendentals=0,
            bytes_accessed=4 * (b_pad * feat_dim + num_classes * feat_dim
                                + b_pad + num_tiles),
        ),
    )(labels_i32, feature_f32, centers.astype(jnp.float32))

    return jnp.sum(partials) / jnp.float32(batch)


if __name__ == "__main__":
    num_classes, feat_dim, batch = 10, 2, 8

    key = jax.random.PRNGKey(0)
    k1, k2, k3 = jax.random.split(key, 3)
    # Deterministic "parameter" init (torch.randn(num_classes, feat_dim) analogue).
    centers = jax.random.normal(k1, (num_classes, feat_dim), dtype=jnp.float32)
    feature = jax.random.normal(k2, (batch, feat_dim), dtype=jnp.float32)
    labels = jax.random.randint(k3, (batch,), 0, num_classes, dtype=jnp.int32)

    loss = jax.block_until_ready(center_loss(feature, centers, labels))

    # Pure-JAX reference of the same (quirky) semantics, via the torch-style
    # ||f||^2 + ||c||^2 - 2 f.c expansion, for an independent sanity check.
    distmat = (jnp.sum(feature ** 2, axis=1, keepdims=True)
               + jnp.sum(centers ** 2, axis=1)[None, :]
               - 2.0 * feature @ centers.T)
    sel = distmat[jnp.arange(batch), labels]
    ref = jnp.mean(jnp.clip(sel * labels.astype(jnp.float32), 1e-12, 1.0e12))
    assert jnp.allclose(loss, ref, rtol=1e-5, atol=1e-5), (loss, ref)

    print("KERNEL_OK")
</pallas_src>

<mosaic_0001>
module attributes {stable_mosaic.version = 11 : i64} {
  func.func @kernel(%arg0: i32, %arg1: memref<8xi32, #tpu.memory_space<smem>>, %arg2: memref<8x2xf32, #tpu.memory_space<vmem>>, %arg3: memref<10x2xf32, #tpu.memory_space<vmem>>, %arg4: memref<1x1xf32, #tpu.memory_space<vmem>>) attributes {dimension_semantics = [#tpu.dimension_semantics<parallel>], iteration_bounds = array<i64: 1>, scalar_prefetch = 1 : i64, scratch_operands = 0 : i64, tpu.core_type = #tpu.core_type<tc>, window_params = [{transform_indices = @transform_0, window_bounds = array<i64: 8, 2>}, {pipeline_mode = #tpu.pipeline_mode<synchronous>, transform_indices = @transform_1, window_bounds = array<i64: 10, 2>}, {transform_indices = @transform_2, window_bounds = array<i64: 1, 1>}]} {
    %c8_i32 = arith.constant 8 : i32
    %0 = arith.muli %arg0, %c8_i32 : i32
    %cst = arith.constant 0.000000e+00 : f32
    %1 = vector.broadcast %cst : f32 to vector<1x1xf32>
    %c0_i32 = arith.constant 0 : i32
    %2 = arith.addi %0, %c0_i32 : i32
    %3 = arith.index_cast %2 : i32 to index
    %4 = memref.load %arg1[%3] : memref<8xi32, #tpu.memory_space<smem>>
    %c0_i32_0 = arith.constant 0 : i32
    %c9_i32 = arith.constant 9 : i32
    %5 = arith.maxsi %c0_i32_0, %4 : i32
    %6 = arith.minsi %c9_i32, %5 : i32
    %7 = arith.index_cast %6 : i32 to index
    %c0 = arith.constant 0 : index
    %8 = vector.load %arg3[%7, %c0] : memref<10x2xf32, #tpu.memory_space<vmem>>, vector<1x2xf32>
    %9 = arith.index_cast %c0_i32 : i32 to index
    %c0_1 = arith.constant 0 : index
    %10 = vector.load %arg2[%9, %c0_1] : memref<8x2xf32, #tpu.memory_space<vmem>>, vector<1x2xf32>
    %11 = arith.subf %10, %8 : vector<1x2xf32>
    %12 = arith.mulf %11, %11 : vector<1x2xf32>
    %cst_2 = arith.constant dense<0.000000e+00> : vector<1xf32>
    %13 = vector.multi_reduction <add>, %12, %cst_2 [1] : vector<1x2xf32> to vector<1xf32>
    %14 = vector.shape_cast %13 : vector<1xf32> to vector<1x1xf32>
    %15 = arith.sitofp %4 : i32 to f32
    %16 = vector.broadcast %15 : f32 to vector<1x1xf32>
    %17 = arith.mulf %14, %16 : vector<1x1xf32>
    %cst_3 = arith.constant 9.99999996E-13 : f32
    %cst_4 = arith.constant 9.99999995E+11 : f32
    %18 = vector.broadcast %cst_3 : f32 to vector<1x1xf32>
    %19 = arith.maximumf %18, %17 : vector<1x1xf32>
    %20 = vector.broadcast %cst_4 : f32 to vector<1x1xf32>
    %21 = arith.minimumf %20, %19 : vector<1x1xf32>
    %22 = arith.addi %0, %c0_i32 : i32
    %c8_i32_5 = arith.constant 8 : i32
    %23 = arith.cmpi slt, %22, %c8_i32_5 : i32
    %cst_6 = arith.constant 0.000000e+00 : f32
    %24 = vector.broadcast %cst_6 : f32 to vector<1x1xf32>
    %25 = arith.select %23, %21, %24 : vector<1x1xf32>
    %26 = arith.addf %1, %25 : vector<1x1xf32>
    %c1_i32 = arith.constant 1 : i32
    %27 = arith.addi %0, %c1_i32 : i32
    %28 = arith.index_cast %27 : i32 to index
    %29 = memref.load %arg1[%28] : memref<8xi32, #tpu.memory_space<smem>>
    %c0_i32_7 = arith.constant 0 : i32
    %c9_i32_8 = arith.constant 9 : i32
    %30 = arith.maxsi %c0_i32_7, %29 : i32
    %31 = arith.minsi %c9_i32_8, %30 : i32
    %32 = arith.index_cast %31 : i32 to index
    %c0_9 = arith.constant 0 : index
    %33 = vector.load %arg3[%32, %c0_9] : memref<10x2xf32, #tpu.memory_space<vmem>>, vector<1x2xf32>
    %34 = arith.index_cast %c1_i32 : i32 to index
    %c0_10 = arith.constant 0 : index
    %35 = vector.load %arg2[%34, %c0_10] : memref<8x2xf32, #tpu.memory_space<vmem>>, vector<1x2xf32>
    %36 = arith.subf %35, %33 : vector<1x2xf32>
    %37 = arith.mulf %36, %36 : vector<1x2xf32>
    %cst_11 = arith.constant dense<0.000000e+00> : vector<1xf32>
    %38 = vector.multi_reduction <add>, %37, %cst_11 [1] : vector<1x2xf32> to vector<1xf32>
    %39 = vector.shape_cast %38 : vector<1xf32> to vector<1x1xf32>
    %40 = arith.sitofp %29 : i32 to f32
    %41 = vector.broadcast %40 : f32 to vector<1x1xf32>
    %42 = arith.mulf %39, %41 : vector<1x1xf32>
    %cst_12 = arith.constant 9.99999996E-13 : f32
    %cst_13 = arith.constant 9.99999995E+11 : f32
    %43 = vector.broadcast %cst_12 : f32 to vector<1x1xf32>
    %44 = arith.maximumf %43, %42 : vector<1x1xf32>
    %45 = vector.broadcast %cst_13 : f32 to vector<1x1xf32>
    %46 = arith.minimumf %45, %44 : vector<1x1xf32>
    %47 = arith.addi %0, %c1_i32 : i32
    %c8_i32_14 = arith.constant 8 : i32
    %48 = arith.cmpi slt, %47, %c8_i32_14 : i32
    %cst_15 = arith.constant 0.000000e+00 : f32
    %49 = vector.broadcast %cst_15 : f32 to vector<1x1xf32>
    %50 = arith.select %48, %46, %49 : vector<1x1xf32>
    %51 = arith.addf %26, %50 : vector<1x1xf32>
    %c2_i32 = arith.constant 2 : i32
    %52 = arith.addi %0, %c2_i32 : i32
    %53 = arith.index_cast %52 : i32 to index
    %54 = memref.load %arg1[%53] : memref<8xi32, #tpu.memory_space<smem>>
    %c0_i32_16 = arith.constant 0 : i32
    %c9_i32_17 = arith.constant 9 : i32
    %55 = arith.maxsi %c0_i32_16, %54 : i32
    %56 = arith.minsi %c9_i32_17, %55 : i32
    %57 = arith.index_cast %56 : i32 to index
    %c0_18 = arith.constant 0 : index
    %58 = vector.load %arg3[%57, %c0_18] : memref<10x2xf32, #tpu.memory_space<vmem>>, vector<1x2xf32>
    %59 = arith.index_cast %c2_i32 : i32 to index
    %c0_19 = arith.constant 0 : index
    %60 = vector.load %arg2[%59, %c0_19] : memref<8x2xf32, #tpu.memory_space<vmem>>, vector<1x2xf32>
    %61 = arith.subf %60, %58 : vector<1x2xf32>
    %62 = arith.mulf %61, %61 : vector<1x2xf32>
    %cst_20 = arith.constant dense<0.000000e+00> : vector<1xf32>
    %63 = vector.multi_reduction <add>, %62, %cst_20 [1] : vector<1x2xf32> to vector<1xf32>
    %64 = vector.shape_cast %63 : vector<1xf32> to vector<1x1xf32>
    %65 = arith.sitofp %54 : i32 to f32
    %66 = vector.broadcast %65 : f32 to vector<1x1xf32>
    %67 = arith.mulf %64, %66 : vector<1x1xf32>
    %cst_21 = arith.constant 9.99999996E-13 : f32
    %cst_22 = arith.constant 9.99999995E+11 : f32
    %68 = vector.broadcast %cst_21 : f32 to vector<1x1xf32>
    %69 = arith.maximumf %68, %67 : vector<1x1xf32>
    %70 = vector.broadcast %cst_22 : f32 to vector<1x1xf32>
    %71 = arith.minimumf %70, %69 : vector<1x1xf32>
    %72 = arith.addi %0, %c2_i32 : i32
    %c8_i32_23 = arith.constant 8 : i32
    %73 = arith.cmpi slt, %72, %c8_i32_23 : i32
    %cst_24 = arith.constant 0.000000e+00 : f32
    %74 = vector.broadcast %cst_24 : f32 to vector<1x1xf32>
    %75 = arith.select %73, %71, %74 : vector<1x1xf32>
    %76 = arith.addf %51, %75 : vector<1x1xf32>
    %c3_i32 = arith.constant 3 : i32
    %77 = arith.addi %0, %c3_i32 : i32
    %78 = arith.index_cast %77 : i32 to index
    %79 = memref.load %arg1[%78] : memref<8xi32, #tpu.memory_space<smem>>
    %c0_i32_25 = arith.constant 0 : i32
    %c9_i32_26 = arith.constant 9 : i32
    %80 = arith.maxsi %c0_i32_25, %79 : i32
    %81 = arith.minsi %c9_i32_26, %80 : i32
    %82 = arith.index_cast %81 : i32 to index
    %c0_27 = arith.constant 0 : index
    %83 = vector.load %arg3[%82, %c0_27] : memref<10x2xf32, #tpu.memory_space<vmem>>, vector<1x2xf32>
    %84 = arith.index_cast %c3_i32 : i32 to index
    %c0_28 = arith.constant 0 : index
    %85 = vector.load %arg2[%84, %c0_28] : memref<8x2xf32, #tpu.memory_space<vmem>>, vector<1x2xf32>
    %86 = arith.subf %85, %83 : vector<1x2xf32>
    %87 = arith.mulf %86, %86 : vector<1x2xf32>
    %cst_29 = arith.constant dense<0.000000e+00> : vector<1xf32>
    %88 = vector.multi_reduction <add>, %87, %cst_29 [1] : vector<1x2xf32> to vector<1xf32>
    %89 = vector.shape_cast %88 : vector<1xf32> to vector<1x1xf32>
    %90 = arith.sitofp %79 : i32 to f32
    %91 = vector.broadcast %90 : f32 to vector<1x1xf32>
    %92 = arith.mulf %89, %91 : vector<1x1xf32>
    %cst_30 = arith.constant 9.99999996E-13 : f32
    %cst_31 = arith.constant 9.99999995E+11 : f32
    %93 = vector.broadcast %cst_30 : f32 to vector<1x1xf32>
    %94 = arith.maximumf %93, %92 : vector<1x1xf32>
    %95 = vector.broadcast %cst_31 : f32 to vector<1x1xf32>
    %96 = arith.minimumf %95, %94 : vector<1x1xf32>
    %97 = arith.addi %0, %c3_i32 : i32
    %c8_i32_32 = arith.constant 8 : i32
    %98 = arith.cmpi slt, %97, %c8_i32_32 : i32
    %cst_33 = arith.constant 0.000000e+00 : f32
    %99 = vector.broadcast %cst_33 : f32 to vector<1x1xf32>
    %100 = arith.select %98, %96, %99 : vector<1x1xf32>
    %101 = arith.addf %76, %100 : vector<1x1xf32>
    %c4_i32 = arith.constant 4 : i32
    %102 = arith.addi %0, %c4_i32 : i32
    %103 = arith.index_cast %102 : i32 to index
    %104 = memref.load %arg1[%103] : memref<8xi32, #tpu.memory_space<smem>>
    %c0_i32_34 = arith.constant 0 : i32
    %c9_i32_35 = arith.constant 9 : i32
    %105 = arith.maxsi %c0_i32_34, %104 : i32
    %106 = arith.minsi %c9_i32_35, %105 : i32
    %107 = arith.index_cast %106 : i32 to index
    %c0_36 = arith.constant 0 : index
    %108 = vector.load %arg3[%107, %c0_36] : memref<10x2xf32, #tpu.memory_space<vmem>>, vector<1x2xf32>
    %109 = arith.index_cast %c4_i32 : i32 to index
    %c0_37 = arith.constant 0 : index
    %110 = vector.load %arg2[%109, %c0_37] : memref<8x2xf32, #tpu.memory_space<vmem>>, vector<1x2xf32>
    %111 = arith.subf %110, %108 : vector<1x2xf32>
    %112 = arith.mulf %111, %111 : vector<1x2xf32>
    %cst_38 = arith.constant dense<0.000000e+00> : vector<1xf32>
    %113 = vector.multi_reduction <add>, %112, %cst_38 [1] : vector<1x2xf32> to vector<1xf32>
    %114 = vector.shape_cast %113 : vector<1xf32> to vector<1x1xf32>
    %115 = arith.sitofp %104 : i32 to f32
    %116 = vector.broadcast %115 : f32 to vector<1x1xf32>
    %117 = arith.mulf %114, %116 : vector<1x1xf32>
    %cst_39 = arith.constant 9.99999996E-13 : f32
    %cst_40 = arith.constant 9.99999995E+11 : f32
    %118 = vector.broadcast %cst_39 : f32 to vector<1x1xf32>
    %119 = arith.maximumf %118, %117 : vector<1x1xf32>
    %120 = vector.broadcast %cst_40 : f32 to vector<1x1xf32>
    %121 = arith.minimumf %120, %119 : vector<1x1xf32>
    %122 = arith.addi %0, %c4_i32 : i32
    %c8_i32_41 = arith.constant 8 : i32
    %123 = arith.cmpi slt, %122, %c8_i32_41 : i32
    %cst_42 = arith.constant 0.000000e+00 : f32
    %124 = vector.broadcast %cst_42 : f32 to vector<1x1xf32>
    %125 = arith.select %123, %121, %124 : vector<1x1xf32>
    %126 = arith.addf %101, %125 : vector<1x1xf32>
    %c5_i32 = arith.constant 5 : i32
    %127 = arith.addi %0, %c5_i32 : i32
    %128 = arith.index_cast %127 : i32 to index
    %129 = memref.load %arg1[%128] : memref<8xi32, #tpu.memory_space<smem>>
    %c0_i32_43 = arith.constant 0 : i32
    %c9_i32_44 = arith.constant 9 : i32
    %130 = arith.maxsi %c0_i32_43, %129 : i32
    %131 = arith.minsi %c9_i32_44, %130 : i32
    %132 = arith.index_cast %131 : i32 to index
    %c0_45 = arith.constant 0 : index
    %133 = vector.load %arg3[%132, %c0_45] : memref<10x2xf32, #tpu.memory_space<vmem>>, vector<1x2xf32>
    %134 = arith.index_cast %c5_i32 : i32 to index
    %c0_46 = arith.constant 0 : index
    %135 = vector.load %arg2[%134, %c0_46] : memref<8x2xf32, #tpu.memory_space<vmem>>, vector<1x2xf32>
    %136 = arith.subf %135, %133 : vector<1x2xf32>
    %137 = arith.mulf %136, %136 : vector<1x2xf32>
    %cst_47 = arith.constant dense<0.000000e+00> : vector<1xf32>
    %138 = vector.multi_reduction <add>, %137, %cst_47 [1] : vector<1x2xf32> to vector<1xf32>
    %139 = vector.shape_cast %138 : vector<1xf32> to vector<1x1xf32>
    %140 = arith.sitofp %129 : i32 to f32
    %141 = vector.broadcast %140 : f32 to vector<1x1xf32>
    %142 = arith.mulf %139, %141 : vector<1x1xf32>
    %cst_48 = arith.constant 9.99999996E-13 : f32
    %cst_49 = arith.constant 9.99999995E+11 : f32
    %143 = vector.broadcast %cst_48 : f32 to vector<1x1xf32>
    %144 = arith.maximumf %143, %142 : vector<1x1xf32>
    %145 = vector.broadcast %cst_49 : f32 to vector<1x1xf32>
    %146 = arith.minimumf %145, %144 : vector<1x1xf32>
    %147 = arith.addi %0, %c5_i32 : i32
    %c8_i32_50 = arith.constant 8 : i32
    %148 = arith.cmpi slt, %147, %c8_i32_50 : i32
    %cst_51 = arith.constant 0.000000e+00 : f32
    %149 = vector.broadcast %cst_51 : f32 to vector<1x1xf32>
    %150 = arith.select %148, %146, %149 : vector<1x1xf32>
    %151 = arith.addf %126, %150 : vector<1x1xf32>
    %c6_i32 = arith.constant 6 : i32
    %152 = arith.addi %0, %c6_i32 : i32
    %153 = arith.index_cast %152 : i32 to index
    %154 = memref.load %arg1[%153] : memref<8xi32, #tpu.memory_space<smem>>
    %c0_i32_52 = arith.constant 0 : i32
    %c9_i32_53 = arith.constant 9 : i32
    %155 = arith.maxsi %c0_i32_52, %154 : i32
    %156 = arith.minsi %c9_i32_53, %155 : i32
    %157 = arith.index_cast %156 : i32 to index
    %c0_54 = arith.constant 0 : index
    %158 = vector.load %arg3[%157, %c0_54] : memref<10x2xf32, #tpu.memory_space<vmem>>, vector<1x2xf32>
    %159 = arith.index_cast %c6_i32 : i32 to index
    %c0_55 = arith.constant 0 : index
    %160 = vector.load %arg2[%159, %c0_55] : memref<8x2xf32, #tpu.memory_space<vmem>>, vector<1x2xf32>
    %161 = arith.subf %160, %158 : vector<1x2xf32>
    %162 = arith.mulf %161, %161 : vector<1x2xf32>
    %cst_56 = arith.constant dense<0.000000e+00> : vector<1xf32>
    %163 = vector.multi_reduction <add>, %162, %cst_56 [1] : vector<1x2xf32> to vector<1xf32>
    %164 = vector.shape_cast %163 : vector<1xf32> to vector<1x1xf32>
    %165 = arith.sitofp %154 : i32 to f32
    %166 = vector.broadcast %165 : f32 to vector<1x1xf32>
    %167 = arith.mulf %164, %166 : vector<1x1xf32>
    %cst_57 = arith.constant 9.99999996E-13 : f32
    %cst_58 = arith.constant 9.99999995E+11 : f32
    %168 = vector.broadcast %cst_57 : f32 to vector<1x1xf32>
    %169 = arith.maximumf %168, %167 : vector<1x1xf32>
    %170 = vector.broadcast %cst_58 : f32 to vector<1x1xf32>
    %171 = arith.minimumf %170, %169 : vector<1x1xf32>
    %172 = arith.addi %0, %c6_i32 : i32
    %c8_i32_59 = arith.constant 8 : i32
    %173 = arith.cmpi slt, %172, %c8_i32_59 : i32
    %cst_60 = arith.constant 0.000000e+00 : f32
    %174 = vector.broadcast %cst_60 : f32 to vector<1x1xf32>
    %175 = arith.select %173, %171, %174 : vector<1x1xf32>
    %176 = arith.addf %151, %175 : vector<1x1xf32>
    %c7_i32 = arith.constant 7 : i32
    %177 = arith.addi %0, %c7_i32 : i32
    %178 = arith.index_cast %177 : i32 to index
    %179 = memref.load %arg1[%178] : memref<8xi32, #tpu.memory_space<smem>>
    %c0_i32_61 = arith.constant 0 : i32
    %c9_i32_62 = arith.constant 9 : i32
    %180 = arith.maxsi %c0_i32_61, %179 : i32
    %181 = arith.minsi %c9_i32_62, %180 : i32
    %182 = arith.index_cast %181 : i32 to index
    %c0_63 = arith.constant 0 : index
    %183 = vector.load %arg3[%182, %c0_63] : memref<10x2xf32, #tpu.memory_space<vmem>>, vector<1x2xf32>
    %184 = arith.index_cast %c7_i32 : i32 to index
    %c0_64 = arith.constant 0 : index
    %185 = vector.load %arg2[%184, %c0_64] : memref<8x2xf32, #tpu.memory_space<vmem>>, vector<1x2xf32>
    %186 = arith.subf %185, %183 : vector<1x2xf32>
    %187 = arith.mulf %186, %186 : vector<1x2xf32>
    %cst_65 = arith.constant dense<0.000000e+00> : vector<1xf32>
    %188 = vector.multi_reduction <add>, %187, %cst_65 [1] : vector<1x2xf32> to vector<1xf32>
    %189 = vector.shape_cast %188 : vector<1xf32> to vector<1x1xf32>
    %190 = arith.sitofp %179 : i32 to f32
    %191 = vector.broadcast %190 : f32 to vector<1x1xf32>
    %192 = arith.mulf %189, %191 : vector<1x1xf32>
    %cst_66 = arith.constant 9.99999996E-13 : f32
    %cst_67 = arith.constant 9.99999995E+11 : f32
    %193 = vector.broadcast %cst_66 : f32 to vector<1x1xf32>
    %194 = arith.maximumf %193, %192 : vector<1x1xf32>
    %195 = vector.broadcast %cst_67 : f32 to vector<1x1xf32>
    %196 = arith.minimumf %195, %194 : vector<1x1xf32>
    %197 = arith.addi %0, %c7_i32 : i32
    %c8_i32_68 = arith.constant 8 : i32
    %198 = arith.cmpi slt, %197, %c8_i32_68 : i32
    %cst_69 = arith.constant 0.000000e+00 : f32
    %199 = vector.broadcast %cst_69 : f32 to vector<1x1xf32>
    %200 = arith.select %198, %196, %199 : vector<1x1xf32>
    %201 = arith.addf %176, %200 : vector<1x1xf32>
    %c8_i32_70 = arith.constant 8 : i32
    %c0_71 = arith.constant 0 : index
    %c0_72 = arith.constant 0 : index
    %202 = vector.load %arg4[%c0_71, %c0_72] : memref<1x1xf32, #tpu.memory_space<vmem>>, vector<1x1xf32>
    tpu.vector_store %arg4[%c0_71, %c0_72], %201 {strides = array<i32>} : memref<1x1xf32, #tpu.memory_space<vmem>>, vector<1x1xf32>,
    return
  }
  func.func @transform_0(%arg0: i32, %arg1: memref<8xi32, #tpu.memory_space<smem>>) -> (i32, i32) {
    %c0_i32 = arith.constant 0 : i32
    %c0_i32_0 = arith.constant 0 : i32
    return %arg0, %c0_i32 : i32, i32
  }
  func.func @transform_1(%arg0: i32, %arg1: memref<8xi32, #tpu.memory_space<smem>>) -> (i32, i32) {
    %c0_i32 = arith.constant 0 : i32
    %c0_i32_0 = arith.constant 0 : i32
    %c0_i32_1 = arith.constant 0 : i32
    return %c0_i32, %c0_i32_0 : i32, i32
  }
  func.func @transform_2(%arg0: i32, %arg1: memref<8xi32, #tpu.memory_space<smem>>) -> (i32, i32) {
    %c0_i32 = arith.constant 0 : i32
    %c0_i32_0 = arith.constant 0 : i32
    return %arg0, %c0_i32 : i32, i32
  }
}

</mosaic_0001>

<bundles_post_ra>
// kernel: tpu_custom_call.1
= control target key start
LH: loop header
LB: loop body
LE: loop exit
PB: predicated region body
PF: predicated region fallthrough
CT: control target
= control target key end

     0   :  { %s353_s15 = smov [#allocation3]   ;;  %s485_s0 = inlined_call_operand.vmem [shape: s32[8], index: 0, kind: input, shape index: {}]   ;;  %s486_s1 = inlined_call_operand.vmem [shape: f32[8,2], index: 1, kind: input, shape index: {}]   ;;  %s487_s2 = inlined_call_operand.vmem [shape: f32[10,2], index: 2, kind: input, shape index: {}]   ;;  %s488_s3 = inlined_call_operand.hbm [shape: f32[1,1], index: 3, kind: output, shape index: {}]  }
   0x1   :  { %s9_s14 = sshll.u32 %s485_s0, 4  ;;  %s10_s14 = int_to_ptr.vmem [resolvable:$true] %s9_s14 }
   0x2   :  { %12 = dma.vmem_to_smem %s10_s14, 16, %s353_s15, [#allocation2] }
   0x3   :  { %349 = dma.done.wait [#allocation2], 16 }
   0x4   :  { %350 = vsyncadd [#allocation2], 4294967280 }
   0x5   :  { %15 = sfence }
   0x6   :  { %s378_s16 = sld [smem:[#allocation3]] }
   0x7   :  { %s380_s17 = sld [smem:[#allocation3 + $0x2]] }
   0x8   :  { %s382_s18 = sld [smem:[#allocation3 + $0x4]] }
   0x9   :  { %s384_s19 = sld [smem:[#allocation3 + $0x1]] }
   0xa   :  { %16 = vsyncpa [#allocation5], 0  ;;  %s386_s0 = sld [smem:[#allocation3 + $0x3]]  ;;  %v29_v0 = vld [vmem:[%s486_s1] sm:$0x1]  ;;  %vm32_vm0 = vcmask 8192  }
   0xb   :  { %s388_s20 = sld [smem:[#allocation3 + $0x5]]  ;;  %v80_v1 = vld [vmem:[%s486_s1 + $0x2] sm:$0x1]  ;;  %v130_v8 = vld [vmem:[%s486_s1 + $0x4] sm:$0x1]  ;;  %vm222_vm1 = vcmask 0  }
   0xc   :  { %p23_p0 = scmp.gt.s32.totalorder %s378_s16, 0  ;;  %p248_p1 = scmp.lt.s32.totalorder %s378_s16, 9  ;;  %v55_v13 = vld [vmem:[%s486_s1 + $0x1] sm:$0x1]  ;;  %v105_v18 = vld [vmem:[%s486_s1 + $0x3] sm:$0x1] }
   0xd   :  { %p74_p2 = scmp.gt.s32.totalorder %s380_s17, 0  ;;  %p260_p3 = scmp.lt.s32.totalorder %s380_s17, 9  ;;  %v155_v23 = vld [vmem:[%s486_s1 + $0x5] sm:$0x1]  ;;  %v180_v30 = vld [vmem:[%s486_s1 + $0x6] sm:$0x1] }
   0xe   :  { %s24_s21 = scalar_select %p23_p0, %s378_s16, 0  ;;  %v205_v33 = vld [vmem:[%s486_s1 + $0x7] sm:$0x1] }
   0xf   :  { %s75_s22 = scalar_select %p74_p2, %s380_s17, 0 }
  0x10   :  { %s490_s21 = smov (!%p248_p1, %s24_s21), 9  ;;  %p124_p4 = scmp.gt.s32.totalorder %s382_s18, 0 }
  0x11   :  { %s492_s22 = smov (!%p260_p3, %s75_s22), 9  ;;  %s27_s27 = scalar_lea.vmem %s487_s2, %s490_s21 }
  0x12   :  { %v28_v2 = vld [vmem:[%s27_s27] sm:$0x1]  ;;  %s78_s5 = scalar_lea.vmem %s487_s2, %s492_s22  ;;  %p272_p5 = scmp.lt.s32.totalorder %s382_s18, 9 }
  0x13   :  { %v30_v3 = vsub.f32 %v29_v0, %v28_v2  ;;  %v79_v4 = vld [vmem:[%s78_s5] sm:$0x1]  ;;  %s125_s6 = scalar_select %p124_p4, %s382_s18, 0 }
  0x14   :  { %v81_v5 = vsub.f32 %v80_v1, %v79_v4  ;;  %p49_p6 = scmp.gt.s32.totalorder %s384_s19, 0  ;;  %p254_p7 = scmp.lt.s32.totalorder %s384_s19, 9 }
  0x15   :  { %v31_v6 = vmul.f32 %v30_v3, %v30_v3  ;;  %s494_s6 = smov (!%p272_p5, %s125_s6), 9  ;;  %p99_p8 = scmp.gt.s32.totalorder %s386_s0, 0 }
  0x16   :  { %v82_v7 = vmul.f32 %v81_v5, %v81_v5  ;;  %s50_s9 = scalar_select %p49_p6, %s384_s19, 0 }
  0x17   :  { %v33_v9 = vsel %vm32_vm0, %v31_v6, 0.0  ;;  %s128_s12 = scalar_lea.vmem %s487_s2, %s494_s6  ;;  %p266_p9 = scmp.lt.s32.totalorder %s386_s0, 9 }
  0x18   :  { %34 = vadd.xlane.f32.xlu0 %v33_v9  ;;  %v83_v10 = vsel %vm32_vm0, %v82_v7, 0.0  ;;  %v129_v11 = vld [vmem:[%s128_s12] sm:$0x1]  ;;  %s496_s9 = smov (!%p254_p7, %s50_s9), 9  ;;  %p149_p10 = scmp.gt.s32.totalorder %s388_s20, 0 }
  0x19   :  { %84 = vadd.xlane.f32.xlu1 %v83_v10  ;;  %v131_v12 = vsub.f32 %v130_v8, %v129_v11  ;;  %s100_s15 = scalar_select %p99_p8, %s386_s0, 0 }
  0x1a   :  { %s53_s23 = scalar_lea.vmem %s487_s2, %s496_s9  ;;  %p278_p11 = scmp.lt.s32.totalorder %s388_s20, 9 }
  0x1b   :  { %v132_v14 = vmul.f32 %v131_v12, %v131_v12  ;;  %v54_v15 = vld [vmem:[%s53_s23] sm:$0x1]  ;;  %s498_s15 = smov (!%p266_p9, %s100_s15), 9  ;;  %s441_s30 = sld [smem:[#allocation3 + $0x6]] }
  0x1c   :  { %v56_v16 = vsub.f32 %v55_v13, %v54_v15  ;;  %s150_s26 = scalar_select %p149_p10, %s388_s20, 0 }
  0x1d   :  { %v133_v17 = vsel %vm32_vm0, %v132_v14, 0.0  ;;  %s103_s29 = scalar_lea.vmem %s487_s2, %s498_s15  ;;  %s447_s6 = sld [smem:[#allocation3 + $0x7]] }
  0x1e   :  { %134 = vadd.xlane.f32.xlu2 %v133_v17  ;;  %v57_v19 = vmul.f32 %v56_v16, %v56_v16  ;;  %v104_v20 = vld [vmem:[%s103_s29] sm:$0x1]  ;;  %s500_s26 = smov (!%p278_p11, %s150_s26), 9  ;;  %s36_s27 = scvt.s32.f32 %s378_s16 }
  0x1f   :  { %v106_v22 = vsub.f32 %v105_v18, %v104_v20  ;;  %s153_s9 = scalar_lea.vmem %s487_s2, %s500_s26  ;;  %s86_s1 = scvt.s32.f32 %s380_s17 }
  0x20   :  { %v58_v21 = vsel %vm32_vm0, %v57_v19, 0.0  ;;  %v154_v25 = vld [vmem:[%s153_s9] sm:$0x1]  ;;  %v37_v41 = vstv %s36_s27  ;;  %s61_s28 = scvt.s32.f32 %s384_s19  ;;  %s111_s29 = scvt.s32.f32 %s386_s0 }
  0x21   :  { %59 = vadd.xlane.f32.xlu0 %v58_v21  ;;  %v107_v24 = vmul.f32 %v106_v22, %v106_v22  ;;  %v156_v26 = vsub.f32 %v155_v23, %v154_v25  ;;  %p174_p12 = scmp.gt.s32.totalorder %s441_s30, 0  ;;  %p284_p13 = scmp.lt.s32.totalorder %s441_s30, 9  ;;  %v87_v43 = vstv %s86_s1 }
  0x22   :  { %v62_v46 = vstv %s61_s28  ;;  %s161_s4 = scvt.s32.f32 %s388_s20  ;;  %v112_v52 = vstv %s111_s29  ;;  %s186_s16 = scvt.s32.f32 %s441_s30 }
  0x23   :  { %v108_v27 = vsel %vm32_vm0, %v107_v24, 0.0  ;;  %v157_v28 = vmul.f32 %v156_v26, %v156_v26  ;;  %s175_s10 = scalar_select %p174_p12, %s441_s30, 0 }
  0x24   :  { %109 = vadd.xlane.f32.xlu1 %v108_v27  ;;  %p199_p0 = scmp.gt.s32.totalorder %s447_s6, 0  ;;  %p290_p1 = scmp.lt.s32.totalorder %s447_s6, 9  ;;  %v162_v60 = vstv %s161_s4  ;;  %v187_v10 = vstv %s186_s16 }
  0x25   :  { %v158_v29 = vsel %vm32_vm0, %v157_v28, 0.0  ;;  %s502_s10 = smov (!%p284_p13, %s175_s10), 9  ;;  %s211_s17 = scvt.s32.f32 %s447_s6 }
  0x26   :  { %159 = vadd.xlane.f32.xlu2 %v158_v29  ;;  %s200_s13 = scalar_select %p199_p0, %s447_s6, 0 }
  0x27   :  { %s178_s21 = scalar_lea.vmem %s487_s2, %s502_s10  ;;  %v212_v14 = vstv %s211_s17  ;;  %s231_s30 = sshll.u32 %s488_s3, 4  ;;  %s232_s30 = int_to_ptr.hbm [resolvable:$true] %s231_s30 }
  0x28   :  { %v179_v31 = vld [vmem:[%s178_s21] sm:$0x1]  ;;  %s504_s13 = smov (!%p290_p1, %s200_s13), 9 }
  0x29   :  { %v181_v32 = vsub.f32 %v180_v30, %v179_v31  ;;  %s203_s26 = scalar_lea.vmem %s487_s2, %s504_s13  ;;  %s136_s2 = scvt.s32.f32 %s382_s18 }
  0x2a   :  { %v204_v35 = vld [vmem:[%s203_s26] sm:$0x1]  ;;  %s354_s18 = smov [#allocation4]  }
  0x2b   :  { %v182_v34 = vmul.f32 %v181_v32, %v181_v32  ;;  %v206_v36 = vsub.f32 %v205_v33, %v204_v35  ;;  %v137_v48 = vstv %s136_s2  ;;  %s229_s19 = sshll.u32 %s354_s18, 4  ;;  %s230_s19 = int_to_ptr.vmem [resolvable:$true] %s229_s19 }
  0x2d   :  { %v183_v37 = vsel %vm32_vm0, %v182_v34, 0.0  ;;  %v207_v38 = vmul.f32 %v206_v36, %v206_v36 }
  0x2e   :  { %184 = vadd.xlane.f32.xlu0 %v183_v37 }
  0x2f   :  { %v208_v39 = vsel %vm32_vm0, %v207_v38, 0.0 }
  0x30   :  { %209 = vadd.xlane.f32.xlu1 %v208_v39 }
  0x8b   :  { %v35_v40 = vpop.xlane.xlu0 %34 }
  0x8c   :  { %v85_v42 = vpop.xlane.xlu1 %84  ;;  %v38_v44 = vmul.f32 %v37_v41, %v35_v40 }
  0x8d   :  { %v88_v47 = vmul.f32 %v87_v43, %v85_v42 }
  0x8e   :  { %v39_v50 = vmax.f32 %v38_v44, 1e-12 }
  0x8f   :  { %v89_v53 = vmax.f32 %v88_v47, 1e-12 }
  0x90   :  { %v40_v57 = vmin.f32 %v39_v50, 1e+12 }
  0x91   :  { %v135_v45 = vpop.xlane.xlu2 %134  ;;  %v90_v61 = vmin.f32 %v89_v53, 1e+12 }
  0x92   :  { %v138_v54 = vmul.f32 %v137_v48, %v135_v45 }
  0x94   :  { %v60_v49 = vpop.xlane.xlu0 %59  ;;  %v139_v62 = vmax.f32 %v138_v54, 1e-12 }
  0x95   :  { %v63_v51 = vmul.f32 %v62_v46, %v60_v49 }
  0x96   :  { %v140_v6 = vmin.f32 %v139_v62, 1e+12 }
  0x97   :  { %v64_v55 = vmax.f32 %v63_v51, 1e-12  ;;  %v110_v56 = vpop.xlane.xlu1 %109 }
  0x98   :  { %v113_v59 = vmul.f32 %v112_v52, %v110_v56 }
  0x99   :  { %v65_v58 = vmin.f32 %v64_v55, 1e+12  ;;  %v160_v1 = vpop.xlane.xlu2 %159 }
  0x9a   :  { %v114_v0 = vmax.f32 %v113_v59, 1e-12  ;;  %v163_v2 = vmul.f32 %v162_v60, %v160_v1 }
  0x9b   :  { %v71_v63 = vadd.f32 %v65_v58, %v40_v57 }
  0x9c   :  { %v115_v4 = vmin.f32 %v114_v0, 1e+12  ;;  %v164_v5 = vmax.f32 %v163_v2, 1e-12 }
  0x9d   :  { %v96_v3 = vadd.f32 %v90_v61, %v71_v63 }
  0x9e   :  { %v165_v8 = vmin.f32 %v164_v5, 1e+12 }
  0x9f   :  { %v121_v7 = vadd.f32 %v115_v4, %v96_v3 }
  0xa1   :  { %v146_v9 = vadd.f32 %v140_v6, %v121_v7  ;;  %v185_v12 = vpop.xlane.xlu0 %184 }
  0xa2   :  { %v188_v13 = vmul.f32 %v187_v10, %v185_v12 }
  0xa3   :  { %v171_v11 = vadd.f32 %v165_v8, %v146_v9  ;;  %v210_v16 = vpop.xlane.xlu1 %209 }
  0xa4   :  { %v189_v15 = vmax.f32 %v188_v13, 1e-12  ;;  %v213_v17 = vmul.f32 %v212_v14, %v210_v16 }
  0xa6   :  { %v190_v18 = vmin.f32 %v189_v15, 1e+12  ;;  %v214_v19 = vmax.f32 %v213_v17, 1e-12 }
  0xa8   :  { %v196_v20 = vadd.f32 %v190_v18, %v171_v11  ;;  %v215_v21 = vmin.f32 %v214_v19, 1e+12 }
  0xaa   :  { %v221_v22 = vadd.f32 %v215_v21, %v196_v20 }
  0xac   :  { %223 = vst.msk [vmem:[#allocation4] sm:$0x1] %vm222_vm1, %v221_v22 }
  0xad   :  { %234 = dma.vmem_to_hbm [thread:$0]  %s230_s19, 16, %s232_s30, [#allocation5]  }
  0xae   :  { %351 = dma.done.wait [#allocation5], 16  }
  0xaf   :  { %352 = vsyncadd [#allocation5], 4294967280 }
  0xb0   :  { %239 = vsyncpa [#allocation5], 1 }

</bundles_post_ra>
